<compile_context>
chip_gen: v7x
topology: tpu7x:2x2x1
jax: 0.10.0
libtpu: 0.0.40
codegen_flags: <defaults>
</compile_context>

<pallas_src>
import functools

import jax
import jax.numpy as jnp
from jax.experimental import pallas as pl
from jax.experimental.pallas import tpu as pltpu

# len(house_features) is data-dependent in the original script; pick a small
# deterministic value consistent with a cleaned housing-features table.
NUM_FEATURES = 16
HIDDEN = (256, 512, 128)
OUT_DIM = 1


def _round_up(n, m):
    return ((n + m - 1) // m) * m


def _choose_tile(B, block_b):
    """Pick (batch tile bb, padded batch B_pad).

    When the grid has more than one step, bb must be a multiple of 128 so the
    lane-dense (1, bb) output block is legal.  For B >= 256 we force >= 2 grid
    steps (v7x TensorCore split + pipeline overlap); small batches use a
    single tile covering round_up(B, 8) rows.
    """
    if B >= 256:
        max_bpt = max(1, min(block_b, 2048) // 128)   # hard cap: v5e VMEM budget
        nblk = pl.cdiv(B, 128)
        bpt = max(1, min(max_bpt, nblk // 2))         # >= 2 grid steps
        bb = 128 * bpt
        B_pad = _round_up(B, bb)
    else:
        bb = _round_up(max(B, 8), 8)
        B_pad = bb
    return bb, B_pad


def mlp_kernel(x_ref, w1_ref, b1_ref, w2_ref, b2_ref, w3_ref, b3_ref,
               w4t_ref, b4_ref, o_ref):
    """Fused 4-layer MLP forward for one batch tile.

    Layer 1 in f32 (K=16, negligible cost); layers 2-4 bf16 MXU with f32
    accumulation.  Final layer is contracted against the batch-transposed
    activations so the output is a lane-dense (1, bb) row.
    """
    x = x_ref[...]                                                    # f32 (bb, F)
    h = jnp.dot(x, w1_ref[...], preferred_element_type=jnp.float32)  # (bb, 256)
    h = jnp.maximum(h + b1_ref[...], 0.0)
    h = jnp.dot(h.astype(jnp.bfloat16), w2_ref[...],
                preferred_element_type=jnp.float32)                  # (bb, 512)
    h = jnp.maximum(h + b2_ref[...], 0.0)
    h = jnp.dot(h.astype(jnp.bfloat16), w3_ref[...],
                preferred_element_type=jnp.float32)                  # (bb, 128)
    h = jnp.maximum(h + b3_ref[...], 0.0)
    # (1, 128) contracted against (bb, 128) on their last dims -> (1, bb).
    y = jax.lax.dot_general(
        w4t_ref[...], h.astype(jnp.bfloat16),
        dimension_numbers=(((1,), (1,)), ((), ())),
        preferred_element_type=jnp.float32)                          # (1, bb)
    o_ref[...] = y + b4_ref[...]                                     # lane-dense f32 store


@functools.partial(jax.jit, static_argnames=("block_b",))
def neural_network_forward(x, params, *, block_b=1024):
    """x: (B, NUM_FEATURES) f32.  params: w1..w4 stored (in, out), b1..b4 (1, out)."""
    B, F = x.shape
    bb, B_pad = _choose_tile(B, block_b)
    grid = (B_pad // bb,)

    # Pad only when the batch does not divide the tile (cheap, often a no-op).
    x_p = x if B_pad == B else jnp.pad(x, ((0, B_pad - B), (0, 0)))

    w1, b1 = params["w1"], params["b1"]                 # f32 layer 1
    w2 = params["w2"].astype(jnp.bfloat16)
    w3 = params["w3"].astype(jnp.bfloat16)
    b2, b3 = params["b2"], params["b3"]
    w4t = params["w4"].T.astype(jnp.bfloat16)           # (1, 128)
    b4 = params["b4"]                                   # (1, 1) f32

    def resident(arr):
        # Whole array resident in VMEM; constant block index -> DMA'd once.
        # Total weight footprint < 1 MiB, far under any VMEM budget.
        return pl.BlockSpec(arr.shape, lambda i: (0, 0))

    out = pl.pallas_call(
        mlp_kernel,
        out_shape=jax.ShapeDtypeStruct((1, B_pad), jnp.float32),
        grid_spec=pltpu.PrefetchScalarGridSpec(
            num_scalar_prefetch=0,
            grid=grid,
            in_specs=[
                pl.BlockSpec((bb, F), lambda i: (i, 0)),   # x batch tile (f32)
                resident(w1), resident(b1),
                resident(w2), resident(b2),
                resident(w3), resident(b3),
                resident(w4t), resident(b4),
            ],
            out_specs=pl.BlockSpec((1, bb), lambda i: (0, i)),
        ),
        compiler_params=pltpu.CompilerParams(
            dimension_semantics=("parallel",)),   # shard batch tiles across TCs (v7x)
    )(x_p, w1, b1, w2, b2, w3, b3, w4t, b4)

    # Tiny (1, B_pad) slice + reshape to the module's (B, 1) output.
    return out[0, :B].reshape(B, OUT_DIM)


def init_params(key):
    """Deterministic init mimicking nn.Linear's uniform(-1/sqrt(fan_in), ...)."""
    dims = [NUM_FEATURES, *HIDDEN, OUT_DIM]
    params = {}
    for idx, (fan_in, fan_out) in enumerate(zip(dims[:-1], dims[1:]), start=1):
        key, kw, kb = jax.random.split(key, 3)
        bound = 1.0 / (fan_in ** 0.5)
        # stored as (in, out) so the kernel does x @ W
        params[f"w{idx}"] = jax.random.uniform(
            kw, (fan_in, fan_out), jnp.float32, -bound, bound)
        params[f"b{idx}"] = jax.random.uniform(
            kb, (1, fan_out), jnp.float32, -bound, bound)
    return params


def reference_forward(x, params):
    """Pure-JAX reference mirroring the kernel numerics (f32 layer 1, bf16 2-4)."""
    h = jnp.dot(x, params["w1"], preferred_element_type=jnp.float32) + params["b1"]
    h = jnp.maximum(h, 0.0)
    for idx in range(2, 5):
        h = jnp.dot(h.astype(jnp.bfloat16),
                    params[f"w{idx}"].astype(jnp.bfloat16),
                    preferred_element_type=jnp.float32) + params[f"b{idx}"]
        if idx < 4:
            h = jnp.maximum(h, 0.0)
    return h


if __name__ == "__main__":
    key = jax.random.PRNGKey(0)
    key, kx = jax.random.split(key)
    params = init_params(key)

    # Small correctness shapes:
    #   (64,):  single tile, no padding
    #   (37,):  batch not a multiple of 8 (padding path)
    #   (300,): multi-step grid (bb=128, B_pad=384, grid=3)
    for batch in (64, 37, 300):
        x = jax.random.normal(kx, (batch, NUM_FEATURES), jnp.float32)
        price = neural_network_forward(x, params)
        jax.block_until_ready(price)
        ref = reference_forward(x, params)
        assert price.shape == (batch, OUT_DIM)
        assert jnp.allclose(price, ref, atol=5e-3, rtol=5e-2), (
            f"mismatch vs reference at batch={batch}")

    print("KERNEL_OK")
</pallas_src>

<mosaic_0001>
module attributes {stable_mosaic.version = 11 : i64} {
  func.func @mlp_kernel(%arg0: i32, %arg1: memref<64x16xf32, #tpu.memory_space<vmem>>, %arg2: memref<16x256xf32, #tpu.memory_space<vmem>>, %arg3: memref<1x256xf32, #tpu.memory_space<vmem>>, %arg4: memref<256x512xbf16, #tpu.memory_space<vmem>>, %arg5: memref<1x512xf32, #tpu.memory_space<vmem>>, %arg6: memref<512x128xbf16, #tpu.memory_space<vmem>>, %arg7: memref<1x128xf32, #tpu.memory_space<vmem>>, %arg8: memref<1x128xbf16, #tpu.memory_space<vmem>>, %arg9: memref<1x1xf32, #tpu.memory_space<vmem>>, %arg10: memref<1x64xf32, #tpu.memory_space<vmem>>) attributes {dimension_semantics = [#tpu.dimension_semantics<parallel>], iteration_bounds = array<i64: 1>, scalar_prefetch = 0 : i64, scratch_operands = 0 : i64, tpu.core_type = #tpu.core_type<tc>, window_params = [{transform_indices = @transform_0, window_bounds = array<i64: 64, 16>}, {pipeline_mode = #tpu.pipeline_mode<synchronous>, transform_indices = @transform_1, window_bounds = array<i64: 16, 256>}, {pipeline_mode = #tpu.pipeline_mode<synchronous>, transform_indices = @transform_2, window_bounds = array<i64: 1, 256>}, {pipeline_mode = #tpu.pipeline_mode<synchronous>, transform_indices = @transform_3, window_bounds = array<i64: 256, 512>}, {pipeline_mode = #tpu.pipeline_mode<synchronous>, transform_indices = @transform_4, window_bounds = array<i64: 1, 512>}, {pipeline_mode = #tpu.pipeline_mode<synchronous>, transform_indices = @transform_5, window_bounds = array<i64: 512, 128>}, {pipeline_mode = #tpu.pipeline_mode<synchronous>, transform_indices = @transform_6, window_bounds = array<i64: 1, 128>}, {pipeline_mode = #tpu.pipeline_mode<synchronous>, transform_indices = @transform_7, window_bounds = array<i64: 1, 128>}, {pipeline_mode = #tpu.pipeline_mode<synchronous>, transform_indices = @transform_8, window_bounds = array<i64: 1, 1>}, {transform_indices = @transform_9, window_bounds = array<i64: 1, 64>}]} {
    %c0 = arith.constant 0 : index
    %c0_0 = arith.constant 0 : index
    %0 = vector.load %arg1[%c0, %c0_0] : memref<64x16xf32, #tpu.memory_space<vmem>>, vector<64x16xf32>
    %c0_1 = arith.constant 0 : index
    %c0_2 = arith.constant 0 : index
    %1 = vector.load %arg2[%c0_1, %c0_2] : memref<16x256xf32, #tpu.memory_space<vmem>>, vector<16x256xf32>
    %cst = arith.constant dense<0.000000e+00> : vector<64x256xf32>
    %2 = tpu.matmul %0, %1, %cst {dimension_numbers = #tpu.dot_dimension_numbers<[1], [0], [0], [1], [0, 0, 1, 1], [], []>} : vector<64x16xf32>, vector<16x256xf32>, vector<64x256xf32> -> vector<64x256xf32>
    %c0_3 = arith.constant 0 : index
    %c0_4 = arith.constant 0 : index
    %3 = vector.load %arg3[%c0_3, %c0_4] : memref<1x256xf32, #tpu.memory_space<vmem>>, vector<1x256xf32>
    %4 = vector.broadcast %3 : vector<1x256xf32> to vector<64x256xf32>
    %5 = arith.addf %2, %4 : vector<64x256xf32>
    %cst_5 = arith.constant 0.000000e+00 : f32
    %6 = vector.broadcast %cst_5 : f32 to vector<64x256xf32>
    %7 = arith.maximumf %5, %6 : vector<64x256xf32>
    %8 = arith.truncf %7 : vector<64x256xf32> to vector<64x256xbf16>
    %c0_6 = arith.constant 0 : index
    %c0_7 = arith.constant 0 : index
    %9 = vector.load %arg4[%c0_6, %c0_7] : memref<256x512xbf16, #tpu.memory_space<vmem>>, vector<256x512xbf16>
    %cst_8 = arith.constant dense<0.000000e+00> : vector<64x512xf32>
    %10 = tpu.matmul %8, %9, %cst_8 {dimension_numbers = #tpu.dot_dimension_numbers<[1], [0], [0], [1], [0, 0, 1, 1], [], []>} : vector<64x256xbf16>, vector<256x512xbf16>, vector<64x512xf32> -> vector<64x512xf32>
    %c0_9 = arith.constant 0 : index
    %c0_10 = arith.constant 0 : index
    %11 = vector.load %arg5[%c0_9, %c0_10] : memref<1x512xf32, #tpu.memory_space<vmem>>, vector<1x512xf32>
    %12 = vector.broadcast %11 : vector<1x512xf32> to vector<64x512xf32>
    %13 = arith.addf %10, %12 : vector<64x512xf32>
    %cst_11 = arith.constant 0.000000e+00 : f32
    %14 = vector.broadcast %cst_11 : f32 to vector<64x512xf32>
    %15 = arith.maximumf %13, %14 : vector<64x512xf32>
    %16 = arith.truncf %15 : vector<64x512xf32> to vector<64x512xbf16>
    %c0_12 = arith.constant 0 : index
    %c0_13 = arith.constant 0 : index
    %17 = vector.load %arg6[%c0_12, %c0_13] : memref<512x128xbf16, #tpu.memory_space<vmem>>, vector<512x128xbf16>
    %cst_14 = arith.constant dense<0.000000e+00> : vector<64x128xf32>
    %18 = tpu.matmul %16, %17, %cst_14 {dimension_numbers = #tpu.dot_dimension_numbers<[1], [0], [0], [1], [0, 0, 1, 1], [], []>} : vector<64x512xbf16>, vector<512x128xbf16>, vector<64x128xf32> -> vector<64x128xf32>
    %c0_15 = arith.constant 0 : index
    %c0_16 = arith.constant 0 : index
    %19 = vector.load %arg7[%c0_15, %c0_16] : memref<1x128xf32, #tpu.memory_space<vmem>>, vector<1x128xf32>
    %20 = vector.broadcast %19 : vector<1x128xf32> to vector<64x128xf32>
    %21 = arith.addf %18, %20 : vector<64x128xf32>
    %cst_17 = arith.constant 0.000000e+00 : f32
    %22 = vector.broadcast %cst_17 : f32 to vector<64x128xf32>
    %23 = arith.maximumf %21, %22 : vector<64x128xf32>
    %c0_18 = arith.constant 0 : index
    %c0_19 = arith.constant 0 : index
    %24 = vector.load %arg8[%c0_18, %c0_19] : memref<1x128xbf16, #tpu.memory_space<vmem>>, vector<1x128xbf16>
    %25 = arith.truncf %23 : vector<64x128xf32> to vector<64x128xbf16>
    %cst_20 = arith.constant dense<0.000000e+00> : vector<1x64xf32>
    %26 = tpu.matmul %24, %25, %cst_20 {dimension_numbers = #tpu.dot_dimension_numbers<[1], [1], [0], [0], [0, 0, 1, 0], [], []>} : vector<1x128xbf16>, vector<64x128xbf16>, vector<1x64xf32> -> vector<1x64xf32>
    %c0_21 = arith.constant 0 : index
    %c0_22 = arith.constant 0 : index
    %27 = vector.load %arg9[%c0_21, %c0_22] : memref<1x1xf32, #tpu.memory_space<vmem>>, vector<1x1xf32>
    %28 = vector.broadcast %27 : vector<1x1xf32> to vector<1x64xf32>
    %29 = arith.addf %26, %28 : vector<1x64xf32>
    %c0_23 = arith.constant 0 : index
    %c0_24 = arith.constant 0 : index
    %30 = vector.load %arg10[%c0_23, %c0_24] : memref<1x64xf32, #tpu.memory_space<vmem>>, vector<1x64xf32>
    tpu.vector_store %arg10[%c0_23, %c0_24], %29 {strides = array<i32>} : memref<1x64xf32, #tpu.memory_space<vmem>>, vector<1x64xf32>,
    return
  }
  func.func @transform_0(%arg0: i32) -> (i32, i32) {
    %c0_i32 = arith.constant 0 : i32
    %c0_i32_0 = arith.constant 0 : i32
    return %arg0, %c0_i32 : i32, i32
  }
  func.func @transform_1(%arg0: i32) -> (i32, i32) {
    %c0_i32 = arith.constant 0 : i32
    %c0_i32_0 = arith.constant 0 : i32
    %c0_i32_1 = arith.constant 0 : i32
    return %c0_i32, %c0_i32_0 : i32, i32
  }
  func.func @transform_2(%arg0: i32) -> (i32, i32) {
    %c0_i32 = arith.constant 0 : i32
    %c0_i32_0 = arith.constant 0 : i32
    %c0_i32_1 = arith.constant 0 : i32
    return %c0_i32, %c0_i32_0 : i32, i32
  }
  func.func @transform_3(%arg0: i32) -> (i32, i32) {
    %c0_i32 = arith.constant 0 : i32
    %c0_i32_0 = arith.constant 0 : i32
    %c0_i32_1 = arith.constant 0 : i32
    return %c0_i32, %c0_i32_0 : i32, i32
  }
  func.func @transform_4(%arg0: i32) -> (i32, i32) {
    %c0_i32 = arith.constant 0 : i32
    %c0_i32_0 = arith.constant 0 : i32
    %c0_i32_1 = arith.constant 0 : i32
    return %c0_i32, %c0_i32_0 : i32, i32
  }
  func.func @transform_5(%arg0: i32) -> (i32, i32) {
    %c0_i32 = arith.constant 0 : i32
    %c0_i32_0 = arith.constant 0 : i32
    %c0_i32_1 = arith.constant 0 : i32
    return %c0_i32, %c0_i32_0 : i32, i32
  }
  func.func @transform_6(%arg0: i32) -> (i32, i32) {
    %c0_i32 = arith.constant 0 : i32
    %c0_i32_0 = arith.constant 0 : i32
    %c0_i32_1 = arith.constant 0 : i32
    return %c0_i32, %c0_i32_0 : i32, i32
  }
  func.func @transform_7(%arg0: i32) -> (i32, i32) {
    %c0_i32 = arith.constant 0 : i32
    %c0_i32_0 = arith.constant 0 : i32
    %c0_i32_1 = arith.constant 0 : i32
    return %c0_i32, %c0_i32_0 : i32, i32
  }
  func.func @transform_8(%arg0: i32) -> (i32, i32) {
    %c0_i32 = arith.constant 0 : i32
    %c0_i32_0 = arith.constant 0 : i32
    %c0_i32_1 = arith.constant 0 : i32
    return %c0_i32, %c0_i32_0 : i32, i32
  }
  func.func @transform_9(%arg0: i32) -> (i32, i32) {
    %c0_i32 = arith.constant 0 : i32
    %c0_i32_0 = arith.constant 0 : i32
    return %c0_i32, %arg0 : i32, i32
  }
}

</mosaic_0001>

<bundles_post_ra>
// kernel: neural_network_forward.1
= control target key start
LH: loop header
LB: loop body
LE: loop exit
PB: predicated region body
PF: predicated region fallthrough
CT: control target
= control target key end

     0   :  { %s2168_s0 = inlined_call_operand.vmem [shape: f32[64,16], index: 0, kind: input, shape index: {}]   ;;  %s2169_s1 = inlined_call_operand.vmem [shape: f32[16,256], index: 1, kind: input, shape index: {}]   ;;  %s2170_s2 = inlined_call_operand.vmem [shape: f32[1,256], index: 2, kind: input, shape index: {}]   ;;  %s2171_s3 = inlined_call_operand.vmem [shape: bf16[256,512], index: 3, kind: input, shape index: {}]   ;;  %s2172_s4 = inlined_call_operand.vmem [shape: f32[1,512], index: 4, kind: input, shape index: {}]   ;;  %s2173_s5 = inlined_call_operand.vmem [shape: bf16[512,128], index: 5, kind: input, shape index: {}]   ;;  %s2174_s6 = inlined_call_operand.vmem [shape: f32[1,128], index: 6, kind: input, shape index: {}]   ;;  %s2175_s7 = inlined_call_operand.vmem [shape: bf16[1,128], index: 7, kind: input, shape index: {}]   ;;  %s2176_s8 = inlined_call_operand.<no memory space> [shape: f32[1,1], index: 8, kind: input, shape index: {}]   ;;  %s2177_s9 = inlined_call_operand.hbm [shape: f32[1,64], index: 9, kind: output, shape index: {}]  }
   0x1   :  { %v14_v0 = vstv %s2176_s8 }
   0x2   :  { %15 = vst [vmem:[#allocation2] sm:$0x1] %v14_v0 }
   0x3   :  { %v45_v1 = vld [vmem:[%s2169_s1 + $0x8] sm:$0xff]  ;;  %v47_v2 = vld [vmem:[%s2169_s1 + $0x18] sm:$0xff]  ;;  %v44_v3 = vld [vmem:[%s2169_s1] sm:$0xff]  ;;  %v1657_v6 = vmov 0.0   ;;  %vm60_vm0 = vcmask 130048  }
   0x4   :  { %v1496_v4 = vpack.c.bf16 %v47_v2, %v45_v1  ;;  %v46_v5 = vld [vmem:[%s2169_s1 + $0x10] sm:$0xff]  ;;  %149 = vmatprep.mubr.f32.mxu0 %v1657_v6  ;;  %v36_v8 = vld [vmem:[%s2168_s0] sm:$0xff]  ;;  %v1507_v10 = vld [vmem:[%s2171_s3 + $0x8] ss:$16 sps:$4 sm:$0xff]  }
   0x5   :  { %v1498_v7 = vpack.c.bf16 %v46_v5, %v44_v3  ;;  %v1505_v9 = vld [vmem:[%s2171_s3 + $0x4] ss:$16 sps:$4 sm:$0xff]   ;;  %v37_v11 = vld [vmem:[%s2168_s0 + $0x8] sm:$0xff]  ;;  %v1510_v13 = vld [vmem:[%s2171_s3] ss:$16 sps:$4 sm:$0xff]  }
   0x6   :  { %1497 = vmatprep.subr.bf16.mxu0 %v1496_v4  ;;  %628 = vmatprep.subr.bf16.mxu1 %v1505_v9  ;;  %v1509_v12 = vld [vmem:[%s2171_s3 + $0xc] ss:$16 sps:$4 sm:$0xff]   ;;  %v1511_v14 = vld [vmem:[%s2171_s3 + $0x24] ss:$16 sps:$4 sm:$0xff]   ;;  %v1513_v15 = vld [vmem:[%s2171_s3 + $0x28] ss:$16 sps:$4 sm:$0xff]  }
   0x7   :  { %1499 = vmatpush1.bf16.msra.mxu0 %v1498_v7  ;;  %v1515_v16 = vld [vmem:[%s2171_s3 + $0x2c] ss:$16 sps:$4 sm:$0xff]   ;;  %629 = vmatpush1.bf16.msra.mxu1 %v1510_v13  ;;  %v1516_v17 = vld [vmem:[%s2171_s3 + $0x20] ss:$16 sps:$4 sm:$0xff]   ;;  %v1517_v18 = vld [vmem:[%s2171_s3 + $0x44] ss:$16 sps:$4 sm:$0xff]  }
   0x8   :  { %701 = vmatprep.subr.bf16.mxu0 %v1509_v12  ;;  %630 = vmatprep.subr.bf16.mxu1 %v1511_v14  ;;  %v38_v19 = vld [vmem:[%s2168_s0 + $0x10] sm:$0xff]  ;;  %v1521_v20 = vld [vmem:[%s2171_s3 + $0x4c] ss:$16 sps:$4 sm:$0xff]   ;;  %v1519_v21 = vld [vmem:[%s2171_s3 + $0x48] ss:$16 sps:$4 sm:$0xff]  }
   0x9   :  { %v1522_v22 = vld [vmem:[%s2171_s3 + $0x40] ss:$16 sps:$4 sm:$0xff]   ;;  %v1523_v23 = vld [vmem:[%s2171_s3 + $0x64] ss:$16 sps:$4 sm:$0xff]   ;;  %v1527_v24 = vld [vmem:[%s2171_s3 + $0x6c] ss:$16 sps:$4 sm:$0xff]  }
   0xa   :  { %1294 = vmatmul.mubr.msk.f32.vlgmr.msra.gmra.mrb[0].mxu0 %vm60_vm0, %v36_v8  ;;  %v39_v25 = vld [vmem:[%s2168_s0 + $0x18] sm:$0xff]  ;;  %v1528_v27 = vld [vmem:[%s2171_s3 + $0x60] ss:$16 sps:$4 sm:$0xff]   ;;  %v1529_v28 = vld [vmem:[%s2171_s3 + $0x84] ss:$16 sps:$4 sm:$0xff]  }
   0xb   :  { %155 = vmatprep.mubr.f32.mxu0 %v1657_v6  ;;  %702 = vmatpush1.bf16.msra.mxu0 %v1507_v10  ;;  %v1525_v26 = vld [vmem:[%s2171_s3 + $0x68] ss:$16 sps:$4 sm:$0xff]   ;;  %v1533_v29 = vld [vmem:[%s2171_s3 + $0x8c] ss:$16 sps:$4 sm:$0xff]   ;;  %v40_v30 = vld [vmem:[%s2168_s0 + $0x20] sm:$0xff] }
   0xc   :  { %703 = vmatprep.subr.bf16.mxu0 %v1515_v16  ;;  %631 = vmatpush1.bf16.msra.mxu1 %v1516_v17  ;;  %v1531_v31 = vld [vmem:[%s2171_s3 + $0x88] ss:$16 sps:$4 sm:$0xff]   ;;  %v1534_v32 = vld [vmem:[%s2171_s3 + $0x80] ss:$16 sps:$4 sm:$0xff]   ;;  %v1535_v33 = vld [vmem:[%s2171_s3 + $0xa4] ss:$16 sps:$4 sm:$0xff]  }
   0xd   :  { %632 = vmatprep.subr.bf16.mxu1 %v1517_v18  ;;  %v1539_v34 = vld [vmem:[%s2171_s3 + $0xac] ss:$16 sps:$4 sm:$0xff]   ;;  %v1537_v36 = vld [vmem:[%s2171_s3 + $0xa8] ss:$16 sps:$4 sm:$0xff]   ;;  %v1540_v37 = vld [vmem:[%s2171_s3 + $0xa0] ss:$16 sps:$4 sm:$0xff]  }
   0xe   :  { %1295 = vmatmul.mubr.msk.f32.gmra.mrb[2].mxu0 %vm60_vm0, %v37_v11  ;;  %v41_v35 = vld [vmem:[%s2168_s0 + $0x28] sm:$0xff]  ;;  %v1541_v38 = vld [vmem:[%s2171_s3 + $0xc4] ss:$16 sps:$4 sm:$0xff]   ;;  %v1546_v42 = vld [vmem:[%s2171_s3 + $0xc0] ss:$16 sps:$4 sm:$0xff]  }
   0xf   :  { %161 = vmatprep.mubr.f32.mxu0 %v1657_v6  ;;  %704 = vmatpush1.bf16.msra.mxu0 %v1513_v15  ;;  %v1545_v39 = vld [vmem:[%s2171_s3 + $0xcc] ss:$16 sps:$4 sm:$0xff]   ;;  %v42_v40 = vld [vmem:[%s2168_s0 + $0x30] sm:$0xff]  ;;  %v1543_v41 = vld [vmem:[%s2171_s3 + $0xc8] ss:$16 sps:$4 sm:$0xff]  }
  0x10   :  { %705 = vmatprep.subr.bf16.mxu0 %v1521_v20  ;;  %633 = vmatpush1.bf16.msra.mxu1 %v1522_v22  ;;  %v1547_v43 = vld [vmem:[%s2171_s3 + $0xe4] ss:$16 sps:$4 sm:$0xff]   ;;  %v1551_v44 = vld [vmem:[%s2171_s3 + $0xec] ss:$16 sps:$4 sm:$0xff]   ;;  %v1549_v46 = vld [vmem:[%s2171_s3 + $0xe8] ss:$16 sps:$4 sm:$0xff]  }
  0x11   :  { %634 = vmatprep.subr.bf16.mxu1 %v1523_v23  ;;  %v43_v45 = vld [vmem:[%s2168_s0 + $0x38] sm:$0xff]  ;;  %v1552_v47 = vld [vmem:[%s2171_s3 + $0xe0] ss:$16 sps:$4 sm:$0xff]   ;;  %v1553_v48 = vld [vmem:[%s2171_s3 + $0x104] ss:$16 sps:$4 sm:$0xff]  }
  0x12   :  { %1296 = vmatmul.mubr.msk.f32.gmra.mrb[4].mxu0 %vm60_vm0, %v38_v19  ;;  %v1557_v49 = vld [vmem:[%s2171_s3 + $0x10c] ss:$16 sps:$4 sm:$0xff]   ;;  %v1555_v50 = vld [vmem:[%s2171_s3 + $0x108] ss:$16 sps:$4 sm:$0xff]   ;;  %v1558_v51 = vld [vmem:[%s2171_s3 + $0x100] ss:$16 sps:$4 sm:$0xff]  }
  0x13   :  { %167 = vmatprep.mubr.f32.mxu0 %v1657_v6  ;;  %706 = vmatpush1.bf16.msra.mxu0 %v1519_v21  ;;  %v1559_v52 = vld [vmem:[%s2171_s3 + $0x124] ss:$16 sps:$4 sm:$0xff]   ;;  %v1563_v53 = vld [vmem:[%s2171_s3 + $0x12c] ss:$16 sps:$4 sm:$0xff]   ;;  %v1561_v54 = vld [vmem:[%s2171_s3 + $0x128] ss:$16 sps:$4 sm:$0xff]  }
  0x14   :  { %707 = vmatprep.subr.bf16.mxu0 %v1527_v24  ;;  %635 = vmatpush1.bf16.msra.mxu1 %v1528_v27  ;;  %v1564_v55 = vld [vmem:[%s2171_s3 + $0x120] ss:$16 sps:$4 sm:$0xff]   ;;  %v1565_v56 = vld [vmem:[%s2171_s3 + $0x144] ss:$16 sps:$4 sm:$0xff]   ;;  %v1569_v57 = vld [vmem:[%s2171_s3 + $0x14c] ss:$16 sps:$4 sm:$0xff]  }
  0x15   :  { %636 = vmatprep.subr.bf16.mxu1 %v1529_v28  ;;  %v1567_v58 = vld [vmem:[%s2171_s3 + $0x148] ss:$16 sps:$4 sm:$0xff]   ;;  %v1570_v59 = vld [vmem:[%s2171_s3 + $0x140] ss:$16 sps:$4 sm:$0xff]   ;;  %v1571_v60 = vld [vmem:[%s2171_s3 + $0x164] ss:$16 sps:$4 sm:$0xff]  }
  0x16   :  { %1297 = vmatmul.mubr.msk.f32.gmra.mrb[6].mxu0 %vm60_vm0, %v39_v25  ;;  %v1575_v61 = vld [vmem:[%s2171_s3 + $0x16c] ss:$16 sps:$4 sm:$0xff]   ;;  %v1573_v62 = vld [vmem:[%s2171_s3 + $0x168] ss:$16 sps:$4 sm:$0xff]   ;;  %v1576_v63 = vld [vmem:[%s2171_s3 + $0x160] ss:$16 sps:$4 sm:$0xff]  }
  0x17   :  { %173 = vmatprep.mubr.f32.mxu0 %v1657_v6  ;;  %708 = vmatpush1.bf16.msra.mxu0 %v1525_v26  ;;  %v1577_v0 = vld [vmem:[%s2171_s3 + $0x184] ss:$16 sps:$4 sm:$0xff]   ;;  %v1581_v1 = vld [vmem:[%s2171_s3 + $0x18c] ss:$16 sps:$4 sm:$0xff]   ;;  %v1579_v2 = vld [vmem:[%s2171_s3 + $0x188] ss:$16 sps:$4 sm:$0xff]  }
  0x18   :  { %709 = vmatprep.subr.bf16.mxu0 %v1533_v29  ;;  %637 = vmatpush1.bf16.msra.mxu1 %v1534_v32  ;;  %v1582_v3 = vld [vmem:[%s2171_s3 + $0x180] ss:$16 sps:$4 sm:$0xff]  }
  0x19   :  { %638 = vmatprep.subr.bf16.mxu1 %v1535_v33 }
  0x1a   :  { %1298 = vmatmul.mubr.msk.f32.gmra.mrb[8].mxu0 %vm60_vm0, %v40_v30 }
  0x1b   :  { %179 = vmatprep.mubr.f32.mxu0 %v1657_v6  ;;  %710 = vmatpush1.bf16.msra.mxu0 %v1531_v31 }
  0x1c   :  { %711 = vmatprep.subr.bf16.mxu0 %v1539_v34  ;;  %639 = vmatpush1.bf16.msra.mxu1 %v1540_v37 }
  0x1d   :  { %640 = vmatprep.subr.bf16.mxu1 %v1541_v38 }
  0x1e   :  { %1299 = vmatmul.mubr.msk.f32.gmra.mrb[10].mxu0 %vm60_vm0, %v41_v35 }
  0x1f   :  { %185 = vmatprep.mubr.f32.mxu0 %v1657_v6  ;;  %712 = vmatpush1.bf16.msra.mxu0 %v1537_v36 }
  0x20   :  { %713 = vmatprep.subr.bf16.mxu0 %v1545_v39  ;;  %641 = vmatpush1.bf16.msra.mxu1 %v1546_v42 }
  0x21   :  { %642 = vmatprep.subr.bf16.mxu1 %v1547_v43 }
  0x22   :  { %1300 = vmatmul.mubr.msk.f32.gmra.mrb[12].mxu0 %vm60_vm0, %v42_v40 }
  0x23   :  { %191 = vmatprep.mubr.f32.mxu0 %v1657_v6  ;;  %714 = vmatpush1.bf16.msra.mxu0 %v1543_v41 }
  0x24   :  { %715 = vmatprep.subr.bf16.mxu0 %v1551_v44  ;;  %643 = vmatpush1.bf16.msra.mxu1 %v1552_v47 }
  0x25   :  { %644 = vmatprep.subr.bf16.mxu1 %v1553_v48 }
  0x26   :  { %1301 = vmatmul.mubr.msk.f32.gmra.mrb[14].mxu0 %vm60_vm0, %v43_v45 }
  0x27   :  { %716 = vmatpush1.bf16.msra.mxu0 %v1549_v46 }
  0x28   :  { %717 = vmatprep.subr.bf16.mxu0 %v1557_v49  ;;  %645 = vmatpush1.bf16.msra.mxu1 %v1558_v51 }
  0x29   :  { %646 = vmatprep.subr.bf16.mxu1 %v1559_v52 }
  0x2b   :  { %718 = vmatpush1.bf16.msra.mxu0 %v1555_v50 }
  0x2c   :  { %719 = vmatprep.subr.bf16.mxu0 %v1563_v53  ;;  %647 = vmatpush1.bf16.msra.mxu1 %v1564_v55 }
  0x2d   :  { %648 = vmatprep.subr.bf16.mxu1 %v1565_v56 }
  0x2f   :  { %720 = vmatpush1.bf16.msra.mxu0 %v1561_v54 }
  0x30   :  { %721 = vmatprep.subr.bf16.mxu0 %v1569_v57  ;;  %649 = vmatpush1.bf16.msra.mxu1 %v1570_v59 }
  0x31   :  { %650 = vmatprep.subr.bf16.mxu1 %v1571_v60 }
  0x33   :  { %722 = vmatpush1.bf16.msra.mxu0 %v1567_v58 }
  0x34   :  { %723 = vmatprep.subr.bf16.mxu0 %v1575_v61  ;;  %651 = vmatpush1.bf16.msra.mxu1 %v1576_v63 }
  0x35   :  { %652 = vmatprep.subr.bf16.mxu1 %v1577_v0 }
  0x37   :  { %724 = vmatpush1.bf16.msra.mxu0 %v1573_v62 }
  0x38   :  { %725 = vmatprep.subr.bf16.mxu0 %v1581_v1  ;;  %653 = vmatpush1.bf16.msra.mxu1 %v1582_v3 }
  0x3b   :  { %726 = vmatpush1.bf16.msra.mxu0 %v1579_v2 }
  0x3c   :  { %16 = vsyncpa [#allocation4], 0  ;;  %v1583_v4 = vld [vmem:[%s2171_s3 + $0x1a4] ss:$16 sps:$4 sm:$0xff]   ;;  %v1587_v5 = vld [vmem:[%s2171_s3 + $0x1ac] ss:$16 sps:$4 sm:$0xff]   ;;  %v50_v19 = vlaneseq }
  0x3d   :  { %v1585_v7 = vld [vmem:[%s2171_s3 + $0x1a8] ss:$16 sps:$4 sm:$0xff]   ;;  %v1588_v8 = vld [vmem:[%s2171_s3 + $0x1a0] ss:$16 sps:$4 sm:$0xff]   ;;  %654 = vmatprep.subr.bf16.mxu1 %v1583_v4  ;;  %727 = vmatprep.subr.bf16.mxu0 %v1587_v5  ;;  %v1589_v9 = vld [vmem:[%s2171_s3 + $0x1c4] ss:$16 sps:$4 sm:$0xff]  }
  0x3e   :  { %655 = vmatpush1.bf16.msra.mxu1 %v1588_v8  ;;  %v1593_v10 = vld [vmem:[%s2171_s3 + $0x1cc] ss:$16 sps:$4 sm:$0xff]   ;;  %v1591_v11 = vld [vmem:[%s2171_s3 + $0x1c8] ss:$16 sps:$4 sm:$0xff]   ;;  %v1594_v12 = vld [vmem:[%s2171_s3 + $0x1c0] ss:$16 sps:$4 sm:$0xff]  }
  0x3f   :  { %728 = vmatpush1.bf16.msra.mxu0 %v1585_v7  ;;  %656 = vmatprep.subr.bf16.mxu1 %v1589_v9  ;;  %v1595_v13 = vld [vmem:[%s2171_s3 + $0x1e4] ss:$16 sps:$4 sm:$0xff]   ;;  %v1599_v14 = vld [vmem:[%s2171_s3 + $0x1ec] ss:$16 sps:$4 sm:$0xff]   ;;  %v1597_v15 = vld [vmem:[%s2171_s3 + $0x1e8] ss:$16 sps:$4 sm:$0xff]  }
  0x40   :  { %729 = vmatprep.subr.bf16.mxu0 %v1593_v10  ;;  %v1600_v16 = vld [vmem:[%s2171_s3 + $0x1e0] ss:$16 sps:$4 sm:$0xff]   ;;  %v1964_v20 = vshrl.u32 %v50_v19, 7  ;;  %v1605_v45 = vld [vmem:[%s2173_s5 + $0x48] sm:$0xff]   ;;  %v1613_v3 = vld [vmem:[%s2173_s5 + $0x58] sm:$0xff]   ;;  %vm1658_vm1 = vmmov 0  }
  0x41   :  { %v1601_v17 = vld [vmem:[%s2173_s5 + $0x40] sm:$0xff]   ;;  %v1606_v46 = vld [vmem:[%s2173_s5 + $0xc8] sm:$0xff]   ;;  %v1609_v56 = vld [vmem:[%s2173_s5 + $0x50] sm:$0xff]   ;;  %s1660_s13 = smov [#allocation3]   ;;  %vm1278_vm2 = vcmask 516096  }
  0x42   :  { %657 = vmatpush1.bf16.msra.mxu1 %v1594_v12  ;;  %v1602_v18 = vld [vmem:[%s2173_s5 + $0xc0] sm:$0xff]   ;;  %v1967_v21 = vsub.s32 0, %v1964_v20  ;;  %v56_v23 = vsub.s32 1, %v1964_v20  ;;  %v1607_v52 = vld [vmem:[%s2173_s5 + $0x8] sm:$0xff]   ;;  %v1610_v57 = vld [vmem:[%s2173_s5 + $0xd0] sm:$0xff]   ;;  %s1286_s14 = sshll.u32 %s1660_s13, 4  ;;  %s1287_s14 = int_to_ptr.vmem [resolvable:$true] %s1286_s14 }
  0x43   :  { %730 = vmatpush1.bf16.msra.mxu0 %v1591_v11  ;;  %658 = vmatprep.subr.bf16.mxu1 %v1595_v13  ;;  %v48_v22 = vld [vmem:[%s2170_s2] sm:$0x3]  ;;  %v1608_v53 = vld [vmem:[%s2173_s5 + $0x88] sm:$0xff]   ;;  %v1611_v0 = vld [vmem:[%s2173_s5 + $0x10] sm:$0xff]   ;;  %s1633_s15 = scalar_lea.vmem %s1287_s14, 16  ;;  %s1637_s16 = scalar_lea.vmem %s1287_s14, 32 }
  0x44   :  { %731 = vmatprep.subr.bf16.mxu0 %v1599_v14  ;;  %v1974_v24 = vrot.slane %v48_v22, %v1967_v21  ;;  %v1978_v26 = vrot.slane %v48_v22, %v56_v23  ;;  %v1603_v42 = vld [vmem:[%s2173_s5] sm:$0xff]   ;;  %v1612_v1 = vld [vmem:[%s2173_s5 + $0x90] sm:$0xff]   ;;  %v1614_v4 = vld [vmem:[%s2173_s5 + $0xd8] sm:$0xff]   ;;  %p1634_p0 = scmp.ne.s32.totalorder %s1287_s14, %s1633_s15  ;;  %p1638_p1 = scmp.lt.s32.totalorder %s1287_s14, %s1287_s14 }
  0x45   :  { %v1604_v43 = vld [vmem:[%s2173_s5 + $0x80] sm:$0xff]   ;;  %v1615_v11 = vld [vmem:[%s2173_s5 + $0x18] sm:$0xff]   ;;  %p1639_p2 = scmp.lt.s32.totalorder %s1637_s16, %s1633_s15 }
  0x46   :  { %659 = vmatpush1.bf16.msra.mxu1 %v1600_v16  ;;  %v1616_v12 = vld [vmem:[%s2173_s5 + $0x98] sm:$0xff]   ;;  %v1618_v16 = vld [vmem:[%s2173_s5 + $0xe0] sm:$0xff]  }
  0x47   :  { %732 = vmatpush1.bf16.msra.mxu0 %v1597_v15  ;;  %1399 = vmatprep.subr.bf16.mxu1 %v1601_v17  ;;  %v1617_v15 = vld [vmem:[%s2173_s5 + $0x60] sm:$0xff]   ;;  %p1640_p3 = por %p1639_p2, %p1638_p1 }
  0x48   :  { %1439 = vmatprep.subr.bf16.mxu0 %v1602_v18 }
  0x49   :  { %p1641_p4 = pnand %p1640_p3, %p1634_p0 }
  0xdd   :  { %v151_v25 = vpop.f32.mrb[0].mxu0 }
  0xde   :  { %v153_v27 = vpop.f32.mrb[1].mxu0  ;;  %v152_v28 = vadd.f32 %v151_v25, %v1974_v24 }
  0xdf   :  { %v154_v29 = vadd.f32 %v153_v27, %v1978_v26 }
  0xe0   :  { %v198_v34 = vmax.f32 %v152_v28, 0.0  ;;  %v1619_v28 = vld [vmem:[%s2173_s5 + $0x20] sm:$0xff]  }
  0xe1   :  { %v157_v30 = vpop.f32.mrb[2].mxu0  ;;  %v199_v36 = vmax.f32 %v154_v29, 0.0  ;;  %v1620_v29 = vld [vmem:[%s2173_s5 + $0xa0] sm:$0xff]  }
  0xe2   :  { %v158_v31 = vadd.f32 %v157_v30, %v1974_v24  ;;  %v159_v32 = vpop.f32.mrb[3].mxu0 }
  0xe3   :  { %v160_v33 = vadd.f32 %v159_v32, %v1978_v26  ;;  %v1622_v32 = vld [vmem:[%s2173_s5 + $0xe8] sm:$0xff]  }
  0xe4   :  { %v200_v35 = vmax.f32 %v158_v31, 0.0  ;;  %v1621_v31 = vld [vmem:[%s2173_s5 + $0x68] sm:$0xff]  }
  0xe5   :  { %v201_v37 = vmax.f32 %v160_v33, 0.0  ;;  %v163_v38 = vpop.f32.mrb[4].mxu0 }
  0xe6   :  { %v214_v39 = vpack.c.bf16 %v200_v35, %v198_v34  ;;  %v165_v40 = vpop.f32.mrb[5].mxu0  ;;  %v164_v44 = vadd.f32 %v163_v38, %v1974_v24 }
  0xe7   :  { %v215_v41 = vpack.c.bf16 %v201_v37, %v199_v36  ;;  %v166_v47 = vadd.f32 %v165_v40, %v1978_v26 }
  0xe8   :  { %v202_v54 = vmax.f32 %v164_v44, 0.0  ;;  %v1625_v44 = vld [vmem:[%s2173_s5 + $0x70] sm:$0xff]  }
  0xe9   :  { %v169_v48 = vpop.f32.mrb[6].mxu0  ;;  %660 = vmatprep.mubr.bf16.mxu1 %v215_v41  ;;  %733 = vmatprep.mubr.bf16.mxu0 %v215_v41  ;;  %v203_v58 = vmax.f32 %v166_v47, 0.0  ;;  %v1628_v47 = vld [vmem:[%s2173_s5 + $0xb0] sm:$0xff]  }
  0xea   :  { %v170_v49 = vadd.f32 %v169_v48, %v1974_v24  ;;  %v171_v50 = vpop.f32.mrb[7].mxu0  ;;  %661 = vmatmul.mubr.bf16.vlgmr.msra.gmra.mrb[0].mxu1 %v214_v39  ;;  %734 = vmatmul.mubr.bf16.vlgmr.msra.gmra.mrb[16].mxu0 %v214_v39  ;;  %v1629_v48 = vld [vmem:[%s2173_s5 + $0x78] sm:$0xff]  }
  0xeb   :  { %v172_v51 = vadd.f32 %v171_v50, %v1978_v26  ;;  %1400 = vmatpush3.bf16.msra.mxu1 %v1603_v42  ;;  %1440 = vmatpush3.bf16.msra.mxu0 %v1604_v43  ;;  %v1631_v50 = vld [vmem:[%s2173_s5 + $0x38] sm:$0xff]  }
  0xec   :  { %v204_v55 = vmax.f32 %v170_v49, 0.0  ;;  %1401 = vmatprep.subr.bf16.mxu1 %v1605_v45  ;;  %1441 = vmatprep.subr.bf16.mxu0 %v1606_v46  ;;  %v1626_v45 = vld [vmem:[%s2173_s5 + $0xf0] sm:$0xff]   ;;  %v1630_v49 = vld [vmem:[%s2173_s5 + $0xf8] sm:$0xff]  }
  0xed   :  { %v205_v59 = vmax.f32 %v172_v51, 0.0  ;;  %v175_v60 = vpop.f32.mrb[8].mxu0  ;;  %v1627_v46 = vld [vmem:[%s2173_s5 + $0x30] sm:$0xff]   ;;  %v1632_v51 = vld [vmem:[%s2173_s5 + $0xb8] sm:$0xff]  }
  0xee   :  { %v216_v61 = vpack.c.bf16 %v204_v55, %v202_v54  ;;  %v177_v62 = vpop.f32.mrb[9].mxu0  ;;  %v176_v2 = vadd.f32 %v175_v60, %v1974_v24  ;;  %v302_v54 = vsub.s32 3, %v1964_v20 }
  0xef   :  { %v217_v63 = vpack.c.bf16 %v205_v59, %v203_v58  ;;  %1402 = vmatpush3.bf16.msra.mxu1 %v1607_v52  ;;  %1442 = vmatpush3.bf16.msra.mxu0 %v1608_v53  ;;  %v178_v5 = vadd.f32 %v177_v62, %v1978_v26  ;;  %v298_v52 = vsub.s32 2, %v1964_v20  ;;  %v286_v53 = vld [vmem:[%s2172_s4] sm:$0xf] }
  0xf0   :  { %1403 = vmatprep.subr.bf16.mxu1 %v1609_v56  ;;  %1443 = vmatprep.subr.bf16.mxu0 %v1610_v57  ;;  %v206_v13 = vmax.f32 %v176_v2, 0.0  ;;  %v2093_v55 = vrot.slane %v286_v53, %v1967_v21  ;;  %v2099_v57 = vrot.slane %v286_v53, %v56_v23  ;;  %v2101_v58 = vrot.slane %v286_v53, %v302_v54 }
  0xf1   :  { %v181_v7 = vpop.f32.mrb[10].mxu0  ;;  %670 = vmatprep.mubr.bf16.mxu1 %v217_v63  ;;  %743 = vmatprep.mubr.bf16.mxu0 %v217_v63  ;;  %v207_v17 = vmax.f32 %v178_v5, 0.0  ;;  %v2095_v56 = vrot.slane %v286_v53, %v298_v52 }
  0xf2   :  { %v182_v8 = vadd.f32 %v181_v7, %v1974_v24  ;;  %v183_v9 = vpop.f32.mrb[11].mxu0  ;;  %671 = vmatmul.mubr.bf16.gmra.mrb[4].mxu1 %v216_v61  ;;  %744 = vmatmul.mubr.bf16.gmra.mrb[20].mxu0 %v216_v61 }
  0xf3   :  { %v184_v10 = vadd.f32 %v183_v9, %v1978_v26  ;;  %1404 = vmatpush3.bf16.msra.mxu1 %v1611_v0  ;;  %1444 = vmatpush3.bf16.msra.mxu0 %v1612_v1 }
  0xf4   :  { %v208_v14 = vmax.f32 %v182_v8, 0.0  ;;  %1405 = vmatprep.subr.bf16.mxu1 %v1613_v3  ;;  %1445 = vmatprep.subr.bf16.mxu0 %v1614_v4 }
  0xf5   :  { %v209_v18 = vmax.f32 %v184_v10, 0.0  ;;  %v187_v19 = vpop.f32.mrb[12].mxu0 }
  0xf6   :  { %v218_v22 = vpack.c.bf16 %v208_v14, %v206_v13  ;;  %v189_v25 = vpop.f32.mrb[13].mxu0  ;;  %v188_v30 = vadd.f32 %v187_v19, %v1974_v24 }
  0xf7   :  { %v219_v27 = vpack.c.bf16 %v209_v18, %v207_v17  ;;  %1406 = vmatpush3.bf16.msra.mxu1 %v1615_v11  ;;  %1446 = vmatpush3.bf16.msra.mxu0 %v1616_v12  ;;  %v190_v33 = vadd.f32 %v189_v25, %v1978_v26 }
  0xf8   :  { %1407 = vmatprep.subr.bf16.mxu1 %v1617_v15  ;;  %1447 = vmatprep.subr.bf16.mxu0 %v1618_v16  ;;  %v210_v38 = vmax.f32 %v188_v30, 0.0 }
  0xf9   :  { %v193_v34 = vpop.f32.mrb[14].mxu0  ;;  %680 = vmatprep.mubr.bf16.mxu1 %v219_v27  ;;  %753 = vmatprep.mubr.bf16.mxu0 %v219_v27  ;;  %v211_v40 = vmax.f32 %v190_v33, 0.0 }
  0xfa   :  { %v194_v35 = vadd.f32 %v193_v34, %v1974_v24  ;;  %v195_v36 = vpop.f32.mrb[15].mxu0  ;;  %681 = vmatmul.mubr.bf16.gmra.mrb[8].mxu1 %v218_v22  ;;  %754 = vmatmul.mubr.bf16.gmra.mrb[24].mxu0 %v218_v22  ;;  %v1623_v24 = vld [vmem:[%s2173_s5 + $0x28] sm:$0xff]  }
  0xfb   :  { %v196_v37 = vadd.f32 %v195_v36, %v1978_v26  ;;  %1408 = vmatpush3.bf16.msra.mxu1 %v1619_v28  ;;  %1448 = vmatpush3.bf16.msra.mxu0 %v1620_v29  ;;  %v1624_v26 = vld [vmem:[%s2173_s5 + $0xa8] sm:$0xff]  }
  0xfc   :  { %v212_v39 = vmax.f32 %v194_v35, 0.0  ;;  %1409 = vmatprep.subr.bf16.mxu1 %v1621_v31  ;;  %1449 = vmatprep.subr.bf16.mxu0 %v1622_v32 }
  0xfd   :  { %v213_v41 = vmax.f32 %v196_v37, 0.0 }
  0xfe   :  { %v220_v42 = vpack.c.bf16 %v212_v39, %v210_v38 }
  0xff   :  { %v221_v43 = vpack.c.bf16 %v213_v41, %v211_v40  ;;  %1410 = vmatpush3.bf16.msra.mxu1 %v1623_v24  ;;  %1450 = vmatpush3.bf16.msra.mxu0 %v1624_v26 }
 0x100   :  { %1411 = vmatprep.subr.bf16.mxu1 %v1625_v44  ;;  %1451 = vmatprep.subr.bf16.mxu0 %v1626_v45 }
 0x101   :  { %690 = vmatprep.mubr.bf16.mxu1 %v221_v43  ;;  %763 = vmatprep.mubr.bf16.mxu0 %v221_v43 }
 0x102   :  { %691 = vmatmul.mubr.bf16.gmra.mrb[12].mxu1 %v220_v42  ;;  %764 = vmatmul.mubr.bf16.gmra.mrb[28].mxu0 %v220_v42 }
 0x103   :  { %1412 = vmatpush3.bf16.msra.mxu1 %v1627_v46  ;;  %1452 = vmatpush3.bf16.msra.mxu0 %v1628_v47 }
 0x104   :  { %1413 = vmatprep.subr.bf16.mxu1 %v1629_v48  ;;  %1453 = vmatprep.subr.bf16.mxu0 %v1630_v49 }
 0x107   :  { %1414 = vmatpush3.bf16.msra.mxu1 %v1631_v50  ;;  %1454 = vmatpush3.bf16.msra.mxu0 %v1632_v51 }
 0x108   :  { %1484 = vmatprep.subr.bf16.mxu1 %v1657_v6 }
 0x1bd   :  { %v662_v59 = vpop.f32.mrb[0].mxu1  ;;  %v735_v60 = vpop.f32.mrb[16].mxu0 }
 0x1be   :  { %v663_v61 = vadd.f32 %v662_v59, %v2093_v55  ;;  %v736_v62 = vadd.f32 %v735_v60, %v2095_v56  ;;  %v664_v63 = vpop.f32.mrb[1].mxu1  ;;  %v737_v0 = vpop.f32.mrb[17].mxu0 }
 0x1bf   :  { %v665_v1 = vadd.f32 %v664_v63, %v2099_v57  ;;  %v738_v2 = vadd.f32 %v737_v0, %v2101_v58  ;;  %v666_v3 = vpop.f32.mrb[2].mxu1  ;;  %v739_v4 = vpop.f32.mrb[18].mxu0 }
 0x1c0   :  { %v667_v20 = vadd.f32 %v666_v3, %v2093_v55  ;;  %v740_v23 = vadd.f32 %v739_v4, %v2095_v56  ;;  %v668_v5 = vpop.f32.mrb[3].mxu1  ;;  %v741_v7 = vpop.f32.mrb[19].mxu0  ;;  %v774_v10 = vmax.f32 %v663_v61, 0.0  ;;  %v776_v11 = vmax.f32 %v736_v62, 0.0 }
 0x1c1   :  { %v669_v8 = vadd.f32 %v668_v5, %v2099_v57  ;;  %v742_v9 = vadd.f32 %v741_v7, %v2101_v58  ;;  %v775_v14 = vmax.f32 %v665_v1, 0.0  ;;  %v777_v15 = vmax.f32 %v738_v2, 0.0 }
 0x1c2   :  { %v778_v12 = vmax.f32 %v667_v20, 0.0  ;;  %v780_v13 = vmax.f32 %v740_v23, 0.0 }
 0x1c3   :  { %v779_v16 = vmax.f32 %v669_v8, 0.0  ;;  %v781_v17 = vmax.f32 %v742_v9, 0.0 }
 0x1c4   :  { %v806_v18 = vpack.c.bf16 %v778_v12, %v774_v10  ;;  %v808_v19 = vpack.c.bf16 %v780_v13, %v776_v11 }
 0x1c5   :  { %v807_v22 = vpack.c.bf16 %v779_v16, %v775_v14  ;;  %v809_v25 = vpack.c.bf16 %v781_v17, %v777_v15  ;;  %v672_v27 = vpop.f32.mrb[4].mxu1  ;;  %v745_v28 = vpop.f32.mrb[20].mxu0 }
 0x1c6   :  { %v673_v29 = vadd.f32 %v672_v27, %v2093_v55  ;;  %v746_v30 = vadd.f32 %v745_v28, %v2095_v56  ;;  %v674_v31 = vpop.f32.mrb[5].mxu1  ;;  %v747_v32 = vpop.f32.mrb[21].mxu0 }
 0x1c7   :  { %v675_v33 = vadd.f32 %v674_v31, %v2099_v57  ;;  %v748_v34 = vadd.f32 %v747_v32, %v2101_v58  ;;  %v676_v35 = vpop.f32.mrb[6].mxu1  ;;  %v749_v36 = vpop.f32.mrb[22].mxu0  ;;  %1117 = vmatprep.mubr.bf16.mxu1 %v807_v22  ;;  %1182 = vmatprep.mubr.bf16.mxu0 %v809_v25 }
 0x1c8   :  { %v677_v37 = vadd.f32 %v676_v35, %v2093_v55  ;;  %v750_v38 = vadd.f32 %v749_v36, %v2095_v56  ;;  %v678_v39 = vpop.f32.mrb[7].mxu1  ;;  %v751_v40 = vpop.f32.mrb[23].mxu0  ;;  %1118 = vmatmul.mubr.bf16.vlgmr.msra.gmra.mrb[16].mxu1 %v806_v18  ;;  %1183 = vmatmul.mubr.bf16.vlgmr.msra.gmra.mrb[32].mxu0 %v808_v19  ;;  %v782_v43 = vmax.f32 %v673_v29, 0.0  ;;  %v784_v24 = vmax.f32 %v746_v30, 0.0 }
 0x1c9   :  { %v679_v41 = vadd.f32 %v678_v39, %v2099_v57  ;;  %v752_v42 = vadd.f32 %v751_v40, %v2101_v58  ;;  %v783_v45 = vmax.f32 %v675_v33, 0.0  ;;  %v785_v46 = vmax.f32 %v748_v34, 0.0 }
 0x1ca   :  { %v786_v26 = vmax.f32 %v677_v37, 0.0  ;;  %v788_v44 = vmax.f32 %v750_v38, 0.0 }
 0x1cb   :  { %v787_v47 = vmax.f32 %v679_v41, 0.0  ;;  %v789_v48 = vmax.f32 %v752_v42, 0.0 }
 0x1cc   :  { %v810_v49 = vpack.c.bf16 %v786_v26, %v782_v43  ;;  %v812_v50 = vpack.c.bf16 %v788_v44, %v784_v24 }
 0x1cd   :  { %v811_v51 = vpack.c.bf16 %v787_v47, %v783_v45  ;;  %v813_v52 = vpack.c.bf16 %v789_v48, %v785_v46  ;;  %v682_v53 = vpop.f32.mrb[8].mxu1  ;;  %v755_v54 = vpop.f32.mrb[24].mxu0 }
 0x1ce   :  { %v683_v59 = vadd.f32 %v682_v53, %v2093_v55  ;;  %v756_v60 = vadd.f32 %v755_v54, %v2095_v56  ;;  %v684_v61 = vpop.f32.mrb[9].mxu1  ;;  %v757_v62 = vpop.f32.mrb[25].mxu0 }
 0x1cf   :  { %v685_v63 = vadd.f32 %v684_v61, %v2099_v57  ;;  %v758_v0 = vadd.f32 %v757_v62, %v2101_v58  ;;  %v686_v1 = vpop.f32.mrb[10].mxu1  ;;  %v759_v2 = vpop.f32.mrb[26].mxu0  ;;  %1125 = vmatprep.mubr.bf16.mxu1 %v811_v51  ;;  %1190 = vmatprep.mubr.bf16.mxu0 %v813_v52  ;;  %v2139_v51 = vld [vmem:[%s2174_s6] ss:$0 sm:$0xff] }
 0x1d0   :  { %v687_v3 = vadd.f32 %v686_v1, %v2093_v55  ;;  %v760_v4 = vadd.f32 %v759_v2, %v2095_v56  ;;  %v688_v20 = vpop.f32.mrb[11].mxu1  ;;  %v761_v23 = vpop.f32.mrb[27].mxu0  ;;  %1126 = vmatmul.mubr.bf16.gmra.mrb[20].mxu1 %v810_v49  ;;  %1191 = vmatmul.mubr.bf16.gmra.mrb[36].mxu0 %v812_v50  ;;  %v790_v8 = vmax.f32 %v683_v59, 0.0  ;;  %v792_v9 = vmax.f32 %v756_v60, 0.0 }
 0x1d1   :  { %v689_v5 = vadd.f32 %v688_v20, %v2099_v57  ;;  %v762_v7 = vadd.f32 %v761_v23, %v2101_v58  ;;  %v791_v12 = vmax.f32 %v685_v63, 0.0  ;;  %v793_v13 = vmax.f32 %v758_v0, 0.0 }
 0x1d2   :  { %v794_v10 = vmax.f32 %v687_v3, 0.0  ;;  %v796_v11 = vmax.f32 %v760_v4, 0.0 }
 0x1d3   :  { %v795_v14 = vmax.f32 %v689_v5, 0.0  ;;  %v797_v15 = vmax.f32 %v762_v7, 0.0 }
 0x1d4   :  { %v814_v16 = vpack.c.bf16 %v794_v10, %v790_v8  ;;  %v816_v17 = vpack.c.bf16 %v796_v11, %v792_v9 }
 0x1d5   :  { %v815_v18 = vpack.c.bf16 %v795_v14, %v791_v12  ;;  %v817_v19 = vpack.c.bf16 %v797_v15, %v793_v13  ;;  %v692_v22 = vpop.f32.mrb[12].mxu1  ;;  %v765_v25 = vpop.f32.mrb[28].mxu0 }
 0x1d6   :  { %v693_v27 = vadd.f32 %v692_v22, %v2093_v55  ;;  %v766_v28 = vadd.f32 %v765_v25, %v2095_v56  ;;  %v694_v29 = vpop.f32.mrb[13].mxu1  ;;  %v767_v30 = vpop.f32.mrb[29].mxu0 }
 0x1d7   :  { %v695_v31 = vadd.f32 %v694_v29, %v2099_v57  ;;  %v768_v32 = vadd.f32 %v767_v30, %v2101_v58  ;;  %v696_v33 = vpop.f32.mrb[14].mxu1  ;;  %v769_v34 = vpop.f32.mrb[30].mxu0  ;;  %1133 = vmatprep.mubr.bf16.mxu1 %v815_v18  ;;  %1198 = vmatprep.mubr.bf16.mxu0 %v817_v19 }
 0x1d8   :  { %v697_v35 = vadd.f32 %v696_v33, %v2093_v55  ;;  %v770_v36 = vadd.f32 %v769_v34, %v2095_v56  ;;  %v698_v37 = vpop.f32.mrb[15].mxu1  ;;  %v771_v38 = vpop.f32.mrb[31].mxu0  ;;  %1134 = vmatmul.mubr.bf16.gmra.mrb[24].mxu1 %v814_v16  ;;  %1199 = vmatmul.mubr.bf16.gmra.mrb[40].mxu0 %v816_v17  ;;  %v798_v41 = vmax.f32 %v693_v27, 0.0  ;;  %v800_v42 = vmax.f32 %v766_v28, 0.0 }
 0x1d9   :  { %v699_v39 = vadd.f32 %v698_v37, %v2099_v57  ;;  %v772_v40 = vadd.f32 %v771_v38, %v2101_v58  ;;  %v799_v26 = vmax.f32 %v695_v31, 0.0  ;;  %v801_v44 = vmax.f32 %v768_v32, 0.0  ;;  %v1228_v57 = vld [vmem:[#allocation2] sm:$0x1] }
 0x1da   :  { %v802_v43 = vmax.f32 %v697_v35, 0.0  ;;  %v804_v24 = vmax.f32 %v770_v36, 0.0  ;;  %v1659_v58 = vmov 0  }
 0x1db   :  { %v803_v45 = vmax.f32 %v699_v39, 0.0  ;;  %v805_v46 = vmax.f32 %v772_v40, 0.0  ;;  %1504 = vset.pattern.permute.xlu0 %v1659_v58 }
 0x1dc   :  { %v818_v47 = vpack.c.bf16 %v802_v43, %v798_v41  ;;  %v820_v55 = vpack.c.bf16 %v804_v24, %v800_v42  ;;  %1231 = vperm.xlu0 %1504, %v1228_v57  }
 0x1dd   :  { %v819_v48 = vpack.c.bf16 %v803_v45, %v799_v26  ;;  %v821_v56 = vpack.c.bf16 %v805_v46, %v801_v44 }
 0x1df   :  { %1141 = vmatprep.mubr.bf16.mxu1 %v819_v48  ;;  %1206 = vmatprep.mubr.bf16.mxu0 %v821_v56 }
 0x1e0   :  { %1142 = vmatmul.mubr.bf16.gmra.mrb[28].mxu1 %v818_v47  ;;  %1207 = vmatmul.mubr.bf16.gmra.mrb[44].mxu0 %v820_v55 }
 0x1e1   :  { %1492 = vmatprep.mubr.msk.bf16.mxu1 %vm1658_vm1, %v1657_v6 }
 0x29b   :  { %v1415_v49 = vpop.f32.mrb[16].mxu1  ;;  %v1455_v50 = vpop.f32.mrb[32].mxu0 }
 0x29c   :  { %v1416_v52 = vpop.f32.mrb[17].mxu1  ;;  %v1456_v53 = vpop.f32.mrb[33].mxu0 }
 0x29d   :  { %v1417_v54 = vadd.f32 %v1416_v52, %v1415_v49  ;;  %v1457_v59 = vadd.f32 %v1456_v53, %v1455_v50  ;;  %v1418_v60 = vpop.f32.mrb[18].mxu1  ;;  %v1458_v61 = vpop.f32.mrb[34].mxu0 }
 0x29e   :  { %v1419_v62 = vpop.f32.mrb[19].mxu1  ;;  %v1459_v63 = vpop.f32.mrb[35].mxu0 }
 0x29f   :  { %v1120_v0 = vadd.f32 %v1417_v54, %v2139_v51  ;;  %v1420_v1 = vadd.f32 %v1419_v62, %v1418_v60  ;;  %v1460_v2 = vadd.f32 %v1459_v63, %v1458_v61 }
 0x2a1   :  { %v1185_v3 = vadd.f32 %v1457_v59, %v1120_v0  ;;  %v1123_v4 = vadd.f32 %v1420_v1, %v2139_v51 }
 0x2a3   :  { %v1188_v20 = vadd.f32 %v1460_v2, %v1123_v4  ;;  %v1421_v23 = vpop.f32.mrb[20].mxu1  ;;  %v1461_v5 = vpop.f32.mrb[36].mxu0  ;;  %v1215_v9 = vmax.f32 %v1185_v3, 0.0 }
 0x2a4   :  { %v1422_v7 = vpop.f32.mrb[21].mxu1  ;;  %v1462_v8 = vpop.f32.mrb[37].mxu0 }
 0x2a5   :  { %v1216_v10 = vmax.f32 %v1188_v20, 0.0  ;;  %v1423_v11 = vadd.f32 %v1422_v7, %v1421_v23  ;;  %v1463_v12 = vadd.f32 %v1462_v8, %v1461_v5  ;;  %v1424_v13 = vpop.f32.mrb[22].mxu1  ;;  %v1464_v14 = vpop.f32.mrb[38].mxu0  ;;  %v1223_v20 = vld [vmem:[%s2175_s7] sm:$0x1] }
 0x2a6   :  { %v1425_v15 = vpop.f32.mrb[23].mxu1  ;;  %v1465_v16 = vpop.f32.mrb[39].mxu0 }
 0x2a7   :  { %v1224_v17 = vpack.c.bf16 %v1216_v10, %v1215_v9  ;;  %v1128_v18 = vadd.f32 %v1423_v11, %v2139_v51  ;;  %v1426_v19 = vadd.f32 %v1425_v15, %v1424_v13  ;;  %v1466_v22 = vadd.f32 %v1465_v16, %v1464_v14  ;;  %v1232_v23 = vpop.permute.xlu0 %1231 }
 0x2a8   :  { %v1237_v5 = vrot.slane %v1232_v23, %v1967_v21 }
 0x2a9   :  { %v1193_v25 = vadd.f32 %v1463_v12, %v1128_v18  ;;  %v1131_v27 = vadd.f32 %v1426_v19, %v2139_v51  ;;  %1485 = vmatpush3.bf16.xpose.msra.mxu1 %v1224_v17 }
 0x2aa   :  { %1486 = vmatprep.subr.bf16.mxu1 %v1657_v6 }
 0x2ab   :  { %v1196_v28 = vadd.f32 %v1466_v22, %v1131_v27  ;;  %v1427_v29 = vpop.f32.mrb[24].mxu1  ;;  %v1467_v30 = vpop.f32.mrb[40].mxu0  ;;  %v1217_v33 = vmax.f32 %v1193_v25, 0.0 }
 0x2ac   :  { %v1428_v31 = vpop.f32.mrb[25].mxu1  ;;  %v1468_v32 = vpop.f32.mrb[41].mxu0 }
 0x2ad   :  { %v1218_v34 = vmax.f32 %v1196_v28, 0.0  ;;  %v1429_v35 = vadd.f32 %v1428_v31, %v1427_v29  ;;  %v1469_v36 = vadd.f32 %v1468_v32, %v1467_v30  ;;  %v1430_v37 = vpop.f32.mrb[26].mxu1  ;;  %v1470_v38 = vpop.f32.mrb[42].mxu0 }
 0x2ae   :  { %v1431_v39 = vpop.f32.mrb[27].mxu1  ;;  %v1471_v40 = vpop.f32.mrb[43].mxu0 }
 0x2af   :  { %v1225_v41 = vpack.c.bf16 %v1218_v34, %v1217_v33  ;;  %v1136_v42 = vadd.f32 %v1429_v35, %v2139_v51  ;;  %v1432_v43 = vadd.f32 %v1431_v39, %v1430_v37  ;;  %v1472_v24 = vadd.f32 %v1471_v40, %v1470_v38 }
 0x2b1   :  { %v1201_v26 = vadd.f32 %v1469_v36, %v1136_v42  ;;  %v1139_v44 = vadd.f32 %v1432_v43, %v2139_v51  ;;  %1487 = vmatpush3.bf16.xpose.msra.mxu1 %v1225_v41 }
 0x2b2   :  { %1488 = vmatprep.subr.bf16.mxu1 %v1657_v6 }
 0x2b3   :  { %v1204_v45 = vadd.f32 %v1472_v24, %v1139_v44  ;;  %v1433_v46 = vpop.f32.mrb[28].mxu1  ;;  %v1473_v47 = vpop.f32.mrb[44].mxu0  ;;  %v1219_v56 = vmax.f32 %v1201_v26, 0.0 }
 0x2b4   :  { %v1434_v55 = vpop.f32.mrb[29].mxu1  ;;  %v1474_v48 = vpop.f32.mrb[45].mxu0 }
 0x2b5   :  { %v1220_v57 = vmax.f32 %v1204_v45, 0.0  ;;  %v1435_v58 = vadd.f32 %v1434_v55, %v1433_v46  ;;  %v1475_v49 = vadd.f32 %v1474_v48, %v1473_v47  ;;  %v1436_v50 = vpop.f32.mrb[30].mxu1  ;;  %v1476_v52 = vpop.f32.mrb[46].mxu0 }
 0x2b6   :  { %v1437_v53 = vpop.f32.mrb[31].mxu1  ;;  %v1477_v54 = vpop.f32.mrb[47].mxu0 }
 0x2b7   :  { %v1226_v59 = vpack.c.bf16 %v1220_v57, %v1219_v56  ;;  %v1144_v60 = vadd.f32 %v1435_v58, %v2139_v51  ;;  %v1438_v61 = vadd.f32 %v1437_v53, %v1436_v50  ;;  %v1478_v62 = vadd.f32 %v1477_v54, %v1476_v52 }
 0x2b9   :  { %v1209_v63 = vadd.f32 %v1475_v49, %v1144_v60  ;;  %v1147_v0 = vadd.f32 %v1438_v61, %v2139_v51  ;;  %1489 = vmatpush3.bf16.xpose.msra.mxu1 %v1226_v59 }
 0x2ba   :  { %1490 = vmatprep.subr.bf16.mxu1 %v1657_v6 }
 0x2bb   :  { %v1212_v1 = vadd.f32 %v1478_v62, %v1147_v0  ;;  %v1221_v2 = vmax.f32 %v1209_v63, 0.0 }
 0x2bd   :  { %v1222_v3 = vmax.f32 %v1212_v1, 0.0 }
 0x2bf   :  { %v1227_v4 = vpack.c.bf16 %v1222_v3, %v1221_v2 }
 0x2c1   :  { %1491 = vmatpush3.bf16.xpose.msra.mxu1 %v1227_v4 }
 0x2c8   :  { %1493 = vmatmul.mubr.bf16.vlgmr.msra.gmra.mrb[32].mxu1 %v1223_v20 }
 0x39b   :  { %v1272_v7 = vpop.f32.mrb[32].mxu1 }
 0x39c   :  { %v1273_v51 = vadd.f32 %v1272_v7, %v1237_v5  ;;  %v1494_v8 = vpop.f32.mrb[33].mxu1 }
 0x39d   :  { %v1275_v6 = vpop.f32.mrb[34].mxu1 }
 0x39e   :  { %v1495_v9 = vpop.f32.mrb[35].mxu1  ;;  %1279 = vst.msk [vmem:[#allocation3] sm:$0x1] %vm1278_vm2, %v1273_v51 }
 0x39f   :  { %1644 = shalt.err (!%p1641_p4)
}
 0x3a0   :  { %s1645_s18 = scalar_lea.hbm %s2177_s9, 16 }
 0x3a1   :  { %p1646_p5 = scmp.ne.s32.totalorder %s2177_s9, %s1645_s18  ;;  %p1649_p6 = scmp.lt.u32.totalorder %s1645_s18, %s2177_s9 }
 0x3a3   :  { %p1651_p7 = pnand %p1649_p6, %p1646_p5 }
 0x3a5   :  { %1654 = shalt.err (!%p1651_p7)
}
 0x3a6   :  { %1289 = dma.vmem_to_hbm [thread:$0]  %s1287_s14, 16, %s2177_s9, [#allocation4]  }
 0x3a7   :  { %1655 = dma.done.wait [#allocation4], 16  }
 0x3a8   :  { %1656 = vsyncadd [#allocation4], 4294967280 }
 0x3a9   :  { %1293 = vsyncpa [#allocation4], 1 }

</bundles_post_ra>
